<compile_context>
chip_gen: v6e
topology: v6e:2x2x1
jax: 0.10.0
libtpu: 0.0.40
codegen_flags: <defaults>
</compile_context>

<pallas_src>
import jax
import jax.numpy as jnp
import numpy as np
from jax.experimental import pallas as pl
from jax.experimental.pallas import tpu as pltpu


def corr_pallas(in1, in2, max_disp=4, stride=2):
    """out[b, d, y, x] = mean_c in1[b,c,y,x] * in2_zeropad[b,c,y+dy,x+dx]
    with d = iy * ndisp + ix, dy = stride*iy, dx = stride*ix (dx fastest),
    matching the PyTorch meshgrid flattening order."""
    B, C, H, W = in1.shape
    HW = H * W
    # Signed offsets relative to the un-padded in2 (oy = dy - max_disp, ...).
    offs = list(range(-max_disp, max_disp + 1, stride))
    ndisp = len(offs)
    D = ndisp * ndisp
    inv_c = 1.0 / C

    # Per-displacement flat lane-roll amounts and validity masks.  The mask is
    # 1/C where in2[y+oy, x+ox] is in-bounds and 0 elsewhere: it reproduces the
    # ConstantPad2d zeros (all wrapped roll lanes land on masked positions) and
    # folds the 1/C of the channel mean for free.
    shifts = []
    mask_np = np.zeros((D, H, W), np.float32)
    for iy, oy in enumerate(offs):
        for ix, ox in enumerate(offs):
            d = iy * ndisp + ix
            shifts.append((-(oy * W + ox)) % HW)       # rolled[i] = x2[i + oy*W + ox]
            y0, y1 = max(0, -oy), min(H, H - oy)
            x0, x1 = max(0, -ox), min(W, W - ox)
            mask_np[d, y0:y1, x0:x1] = inv_c
    mask = jnp.asarray(mask_np.reshape(D, HW))         # (D, HW) float32, tiny

    # Lane-dense flattened spatial layout (free reshape, no extra HBM pass).
    in1f = in1.reshape(B, C, HW)
    in2f = in2.reshape(B, C, HW)

    def kernel(x1_ref, x2_ref, m_ref, out_ref):
        # x1_ref/x2_ref: (C, HW) native dtype   m_ref: (D, HW) f32   out: (D, HW)
        x1 = x1_ref[...]                        # keep packed / native dtype
        x2 = x2_ref[...]
        rows = []
        for s in shifts:
            # One XLU lane roll per displacement, in the native (packed) dtype.
            rolled = x2 if s == 0 else pltpu.roll(x2, s, axis=1)
            prod = x1 * rolled                  # native-dtype VPU multiply
            # Promote only at the channel reduction (f32 accumulation).
            rows.append(jnp.sum(prod.astype(jnp.float32), axis=0, keepdims=True))
        stacked = jnp.concatenate(rows, axis=0)                     # (D, HW) f32
        # Mask (zero padding) + 1/C mean applied on the stacked block, then one
        # dense (D, HW) store; HBM writeback is a single dense DMA per batch.
        out_ref[...] = (stacked * m_ref[...]).astype(out_ref.dtype)

    # Scoped-VMEM estimate: double-buffered in1/in2/out blocks + resident mask
    # + in-kernel f32 temporaries (stacked result, transient rolled/product).
    itemsize = jnp.dtype(in1.dtype).itemsize
    block_bytes = (
        2 * (2 * C * HW * itemsize)   # in1 + in2, double-buffered
        + 2 * (D * HW * itemsize)     # output block, double-buffered
        + D * HW * 4                  # mask: constant index_map -> resident once
    )
    temp_bytes = D * HW * 4 + 2 * C * HW * 4
    needed = block_bytes + temp_bytes

    vmem_limit = None
    if needed > 12 * 1024 * 1024:     # exceeds v5e's 16 MiB scoped default
        try:
            phys = int(pltpu.get_tpu_info().vmem_capacity_bytes)
        except Exception:
            phys = 128 << 20
        # Leave >=25% headroom for compiler-internal scratch (v7x: 64 MiB total).
        vmem_limit = int(min(needed + (4 << 20), (phys * 3) // 4))

    out = pl.pallas_call(
        kernel,
        out_shape=jax.ShapeDtypeStruct((B, D, HW), in1.dtype),
        grid_spec=pltpu.PrefetchScalarGridSpec(
            num_scalar_prefetch=0,
            grid=(B,),
            in_specs=[
                pl.BlockSpec((None, C, HW), lambda b: (b, 0, 0)),
                pl.BlockSpec((None, C, HW), lambda b: (b, 0, 0)),
                pl.BlockSpec((D, HW), lambda b: (0, 0)),   # resident, fetched once
            ],
            out_specs=pl.BlockSpec((None, D, HW), lambda b: (b, 0, 0)),
        ),
        compiler_params=pltpu.CompilerParams(
            dimension_semantics=("parallel",),
            vmem_limit_bytes=vmem_limit,
        ),
    )(in1f, in2f, mask)

    return out.reshape(B, D, H, W)


def corr_ref(in1, in2, max_disp=4, stride=2):
    """Plain-JAX reference mirroring the PyTorch forward."""
    B, C, H, W = in1.shape
    in2p = jnp.pad(in2, ((0, 0), (0, 0), (max_disp, max_disp), (max_disp, max_disp)))
    outs = []
    for dy in range(0, 2 * max_disp + 1, stride):
        for dx in range(0, 2 * max_disp + 1, stride):
            outs.append(jnp.mean(in1 * in2p[:, :, dy:dy + H, dx:dx + W],
                                 axis=1, keepdims=True))
    return jnp.concatenate(outs, axis=1)


if __name__ == "__main__":
    key = jax.random.PRNGKey(0)
    k1, k2 = jax.random.split(key)
    B, C, H, W = 2, 4, 16, 16
    in1 = jax.random.normal(k1, (B, C, H, W), dtype=jnp.float32)
    in2 = jax.random.normal(k2, (B, C, H, W), dtype=jnp.float32)

    out = corr_pallas(in1, in2, max_disp=4, stride=2)
    out = jax.block_until_ready(out)

    assert out.shape == (B, 25, H, W), out.shape
    ref = corr_ref(in1, in2, max_disp=4, stride=2)
    np.testing.assert_allclose(np.asarray(out), np.asarray(ref), rtol=1e-5, atol=1e-5)

    print("KERNEL_OK")
</pallas_src>

<mosaic_0001>
module attributes {stable_mosaic.version = 11 : i64} {
  func.func @kernel(%arg0: i32, %arg1: memref<1x4x256xf32, #tpu.memory_space<vmem>>, %arg2: memref<1x4x256xf32, #tpu.memory_space<vmem>>, %arg3: memref<25x256xf32, #tpu.memory_space<vmem>>, %arg4: memref<1x25x256xf32, #tpu.memory_space<vmem>>) attributes {dimension_semantics = [#tpu.dimension_semantics<parallel>], iteration_bounds = array<i64: 2>, scalar_prefetch = 0 : i64, scratch_operands = 0 : i64, tpu.core_type = #tpu.core_type<tc>, window_params = [{transform_indices = @transform_0, window_bounds = array<i64: 1, 4, 256>}, {transform_indices = @transform_1, window_bounds = array<i64: 1, 4, 256>}, {pipeline_mode = #tpu.pipeline_mode<synchronous>, transform_indices = @transform_2, window_bounds = array<i64: 25, 256>}, {transform_indices = @transform_3, window_bounds = array<i64: 1, 25, 256>}]} {
    %c0 = arith.constant 0 : index
    %c0_0 = arith.constant 0 : index
    %c0_1 = arith.constant 0 : index
    %0 = vector.load %arg1[%c0, %c0_0, %c0_1] : memref<1x4x256xf32, #tpu.memory_space<vmem>>, vector<1x4x256xf32>
    %1 = vector.shape_cast %0 : vector<1x4x256xf32> to vector<4x256xf32>
    %c0_2 = arith.constant 0 : index
    %c0_3 = arith.constant 0 : index
    %c0_4 = arith.constant 0 : index
    %2 = vector.load %arg2[%c0_2, %c0_3, %c0_4] : memref<1x4x256xf32, #tpu.memory_space<vmem>>, vector<1x4x256xf32>
    %3 = vector.shape_cast %2 : vector<1x4x256xf32> to vector<4x256xf32>
    %c68_i32 = arith.constant 68 : i32
    %4 = tpu.dynamic_rotate %3 by %c68_i32 dim 1 : vector<4x256xf32>, i32 -> vector<4x256xf32>
    %5 = arith.mulf %1, %4 : vector<4x256xf32>
    %cst = arith.constant dense<0.000000e+00> : vector<256xf32>
    %6 = vector.multi_reduction <add>, %5, %cst [0] : vector<4x256xf32> to vector<256xf32>
    %7 = vector.shape_cast %6 : vector<256xf32> to vector<1x256xf32>
    %c66_i32 = arith.constant 66 : i32
    %8 = tpu.dynamic_rotate %3 by %c66_i32 dim 1 : vector<4x256xf32>, i32 -> vector<4x256xf32>
    %9 = arith.mulf %1, %8 : vector<4x256xf32>
    %cst_5 = arith.constant dense<0.000000e+00> : vector<256xf32>
    %10 = vector.multi_reduction <add>, %9, %cst_5 [0] : vector<4x256xf32> to vector<256xf32>
    %11 = vector.shape_cast %10 : vector<256xf32> to vector<1x256xf32>
    %c64_i32 = arith.constant 64 : i32
    %12 = tpu.dynamic_rotate %3 by %c64_i32 dim 1 : vector<4x256xf32>, i32 -> vector<4x256xf32>
    %13 = arith.mulf %1, %12 : vector<4x256xf32>
    %cst_6 = arith.constant dense<0.000000e+00> : vector<256xf32>
    %14 = vector.multi_reduction <add>, %13, %cst_6 [0] : vector<4x256xf32> to vector<256xf32>
    %15 = vector.shape_cast %14 : vector<256xf32> to vector<1x256xf32>
    %c62_i32 = arith.constant 62 : i32
    %16 = tpu.dynamic_rotate %3 by %c62_i32 dim 1 : vector<4x256xf32>, i32 -> vector<4x256xf32>
    %17 = arith.mulf %1, %16 : vector<4x256xf32>
    %cst_7 = arith.constant dense<0.000000e+00> : vector<256xf32>
    %18 = vector.multi_reduction <add>, %17, %cst_7 [0] : vector<4x256xf32> to vector<256xf32>
    %19 = vector.shape_cast %18 : vector<256xf32> to vector<1x256xf32>
    %c60_i32 = arith.constant 60 : i32
    %20 = tpu.dynamic_rotate %3 by %c60_i32 dim 1 : vector<4x256xf32>, i32 -> vector<4x256xf32>
    %21 = arith.mulf %1, %20 : vector<4x256xf32>
    %cst_8 = arith.constant dense<0.000000e+00> : vector<256xf32>
    %22 = vector.multi_reduction <add>, %21, %cst_8 [0] : vector<4x256xf32> to vector<256xf32>
    %23 = vector.shape_cast %22 : vector<256xf32> to vector<1x256xf32>
    %c36_i32 = arith.constant 36 : i32
    %24 = tpu.dynamic_rotate %3 by %c36_i32 dim 1 : vector<4x256xf32>, i32 -> vector<4x256xf32>
    %25 = arith.mulf %1, %24 : vector<4x256xf32>
    %cst_9 = arith.constant dense<0.000000e+00> : vector<256xf32>
    %26 = vector.multi_reduction <add>, %25, %cst_9 [0] : vector<4x256xf32> to vector<256xf32>
    %27 = vector.shape_cast %26 : vector<256xf32> to vector<1x256xf32>
    %c34_i32 = arith.constant 34 : i32
    %28 = tpu.dynamic_rotate %3 by %c34_i32 dim 1 : vector<4x256xf32>, i32 -> vector<4x256xf32>
    %29 = arith.mulf %1, %28 : vector<4x256xf32>
    %cst_10 = arith.constant dense<0.000000e+00> : vector<256xf32>
    %30 = vector.multi_reduction <add>, %29, %cst_10 [0] : vector<4x256xf32> to vector<256xf32>
    %31 = vector.shape_cast %30 : vector<256xf32> to vector<1x256xf32>
    %c32_i32 = arith.constant 32 : i32
    %32 = tpu.dynamic_rotate %3 by %c32_i32 dim 1 : vector<4x256xf32>, i32 -> vector<4x256xf32>
    %33 = arith.mulf %1, %32 : vector<4x256xf32>
    %cst_11 = arith.constant dense<0.000000e+00> : vector<256xf32>
    %34 = vector.multi_reduction <add>, %33, %cst_11 [0] : vector<4x256xf32> to vector<256xf32>
    %35 = vector.shape_cast %34 : vector<256xf32> to vector<1x256xf32>
    %c30_i32 = arith.constant 30 : i32
    %36 = tpu.dynamic_rotate %3 by %c30_i32 dim 1 : vector<4x256xf32>, i32 -> vector<4x256xf32>
    %37 = arith.mulf %1, %36 : vector<4x256xf32>
    %cst_12 = arith.constant dense<0.000000e+00> : vector<256xf32>
    %38 = vector.multi_reduction <add>, %37, %cst_12 [0] : vector<4x256xf32> to vector<256xf32>
    %39 = vector.shape_cast %38 : vector<256xf32> to vector<1x256xf32>
    %c28_i32 = arith.constant 28 : i32
    %40 = tpu.dynamic_rotate %3 by %c28_i32 dim 1 : vector<4x256xf32>, i32 -> vector<4x256xf32>
    %41 = arith.mulf %1, %40 : vector<4x256xf32>
    %cst_13 = arith.constant dense<0.000000e+00> : vector<256xf32>
    %42 = vector.multi_reduction <add>, %41, %cst_13 [0] : vector<4x256xf32> to vector<256xf32>
    %43 = vector.shape_cast %42 : vector<256xf32> to vector<1x256xf32>
    %c4_i32 = arith.constant 4 : i32
    %44 = tpu.dynamic_rotate %3 by %c4_i32 dim 1 : vector<4x256xf32>, i32 -> vector<4x256xf32>
    %45 = arith.mulf %1, %44 : vector<4x256xf32>
    %cst_14 = arith.constant dense<0.000000e+00> : vector<256xf32>
    %46 = vector.multi_reduction <add>, %45, %cst_14 [0] : vector<4x256xf32> to vector<256xf32>
    %47 = vector.shape_cast %46 : vector<256xf32> to vector<1x256xf32>
    %c2_i32 = arith.constant 2 : i32
    %48 = tpu.dynamic_rotate %3 by %c2_i32 dim 1 : vector<4x256xf32>, i32 -> vector<4x256xf32>
    %49 = arith.mulf %1, %48 : vector<4x256xf32>
    %cst_15 = arith.constant dense<0.000000e+00> : vector<256xf32>
    %50 = vector.multi_reduction <add>, %49, %cst_15 [0] : vector<4x256xf32> to vector<256xf32>
    %51 = vector.shape_cast %50 : vector<256xf32> to vector<1x256xf32>
    %52 = arith.mulf %1, %3 : vector<4x256xf32>
    %cst_16 = arith.constant dense<0.000000e+00> : vector<256xf32>
    %53 = vector.multi_reduction <add>, %52, %cst_16 [0] : vector<4x256xf32> to vector<256xf32>
    %54 = vector.shape_cast %53 : vector<256xf32> to vector<1x256xf32>
    %c254_i32 = arith.constant 254 : i32
    %55 = tpu.dynamic_rotate %3 by %c254_i32 dim 1 : vector<4x256xf32>, i32 -> vector<4x256xf32>
    %56 = arith.mulf %1, %55 : vector<4x256xf32>
    %cst_17 = arith.constant dense<0.000000e+00> : vector<256xf32>
    %57 = vector.multi_reduction <add>, %56, %cst_17 [0] : vector<4x256xf32> to vector<256xf32>
    %58 = vector.shape_cast %57 : vector<256xf32> to vector<1x256xf32>
    %c252_i32 = arith.constant 252 : i32
    %59 = tpu.dynamic_rotate %3 by %c252_i32 dim 1 : vector<4x256xf32>, i32 -> vector<4x256xf32>
    %60 = arith.mulf %1, %59 : vector<4x256xf32>
    %cst_18 = arith.constant dense<0.000000e+00> : vector<256xf32>
    %61 = vector.multi_reduction <add>, %60, %cst_18 [0] : vector<4x256xf32> to vector<256xf32>
    %62 = vector.shape_cast %61 : vector<256xf32> to vector<1x256xf32>
    %c228_i32 = arith.constant 228 : i32
    %63 = tpu.dynamic_rotate %3 by %c228_i32 dim 1 : vector<4x256xf32>, i32 -> vector<4x256xf32>
    %64 = arith.mulf %1, %63 : vector<4x256xf32>
    %cst_19 = arith.constant dense<0.000000e+00> : vector<256xf32>
    %65 = vector.multi_reduction <add>, %64, %cst_19 [0] : vector<4x256xf32> to vector<256xf32>
    %66 = vector.shape_cast %65 : vector<256xf32> to vector<1x256xf32>
    %c226_i32 = arith.constant 226 : i32
    %67 = tpu.dynamic_rotate %3 by %c226_i32 dim 1 : vector<4x256xf32>, i32 -> vector<4x256xf32>
    %68 = arith.mulf %1, %67 : vector<4x256xf32>
    %cst_20 = arith.constant dense<0.000000e+00> : vector<256xf32>
    %69 = vector.multi_reduction <add>, %68, %cst_20 [0] : vector<4x256xf32> to vector<256xf32>
    %70 = vector.shape_cast %69 : vector<256xf32> to vector<1x256xf32>
    %c224_i32 = arith.constant 224 : i32
    %71 = tpu.dynamic_rotate %3 by %c224_i32 dim 1 : vector<4x256xf32>, i32 -> vector<4x256xf32>
    %72 = arith.mulf %1, %71 : vector<4x256xf32>
    %cst_21 = arith.constant dense<0.000000e+00> : vector<256xf32>
    %73 = vector.multi_reduction <add>, %72, %cst_21 [0] : vector<4x256xf32> to vector<256xf32>
    %74 = vector.shape_cast %73 : vector<256xf32> to vector<1x256xf32>
    %c222_i32 = arith.constant 222 : i32
    %75 = tpu.dynamic_rotate %3 by %c222_i32 dim 1 : vector<4x256xf32>, i32 -> vector<4x256xf32>
    %76 = arith.mulf %1, %75 : vector<4x256xf32>
    %cst_22 = arith.constant dense<0.000000e+00> : vector<256xf32>
    %77 = vector.multi_reduction <add>, %76, %cst_22 [0] : vector<4x256xf32> to vector<256xf32>
    %78 = vector.shape_cast %77 : vector<256xf32> to vector<1x256xf32>
    %c220_i32 = arith.constant 220 : i32
    %79 = tpu.dynamic_rotate %3 by %c220_i32 dim 1 : vector<4x256xf32>, i32 -> vector<4x256xf32>
    %80 = arith.mulf %1, %79 : vector<4x256xf32>
    %cst_23 = arith.constant dense<0.000000e+00> : vector<256xf32>
    %81 = vector.multi_reduction <add>, %80, %cst_23 [0] : vector<4x256xf32> to vector<256xf32>
    %82 = vector.shape_cast %81 : vector<256xf32> to vector<1x256xf32>
    %c196_i32 = arith.constant 196 : i32
    %83 = tpu.dynamic_rotate %3 by %c196_i32 dim 1 : vector<4x256xf32>, i32 -> vector<4x256xf32>
    %84 = arith.mulf %1, %83 : vector<4x256xf32>
    %cst_24 = arith.constant dense<0.000000e+00> : vector<256xf32>
    %85 = vector.multi_reduction <add>, %84, %cst_24 [0] : vector<4x256xf32> to vector<256xf32>
    %86 = vector.shape_cast %85 : vector<256xf32> to vector<1x256xf32>
    %c194_i32 = arith.constant 194 : i32
    %87 = tpu.dynamic_rotate %3 by %c194_i32 dim 1 : vector<4x256xf32>, i32 -> vector<4x256xf32>
    %88 = arith.mulf %1, %87 : vector<4x256xf32>
    %cst_25 = arith.constant dense<0.000000e+00> : vector<256xf32>
    %89 = vector.multi_reduction <add>, %88, %cst_25 [0] : vector<4x256xf32> to vector<256xf32>
    %90 = vector.shape_cast %89 : vector<256xf32> to vector<1x256xf32>
    %c192_i32 = arith.constant 192 : i32
    %91 = tpu.dynamic_rotate %3 by %c192_i32 dim 1 : vector<4x256xf32>, i32 -> vector<4x256xf32>
    %92 = arith.mulf %1, %91 : vector<4x256xf32>
    %cst_26 = arith.constant dense<0.000000e+00> : vector<256xf32>
    %93 = vector.multi_reduction <add>, %92, %cst_26 [0] : vector<4x256xf32> to vector<256xf32>
    %94 = vector.shape_cast %93 : vector<256xf32> to vector<1x256xf32>
    %c190_i32 = arith.constant 190 : i32
    %95 = tpu.dynamic_rotate %3 by %c190_i32 dim 1 : vector<4x256xf32>, i32 -> vector<4x256xf32>
    %96 = arith.mulf %1, %95 : vector<4x256xf32>
    %cst_27 = arith.constant dense<0.000000e+00> : vector<256xf32>
    %97 = vector.multi_reduction <add>, %96, %cst_27 [0] : vector<4x256xf32> to vector<256xf32>
    %98 = vector.shape_cast %97 : vector<256xf32> to vector<1x256xf32>
    %c188_i32 = arith.constant 188 : i32
    %99 = tpu.dynamic_rotate %3 by %c188_i32 dim 1 : vector<4x256xf32>, i32 -> vector<4x256xf32>
    %100 = arith.mulf %1, %99 : vector<4x256xf32>
    %cst_28 = arith.constant dense<0.000000e+00> : vector<256xf32>
    %101 = vector.multi_reduction <add>, %100, %cst_28 [0] : vector<4x256xf32> to vector<256xf32>
    %102 = vector.shape_cast %101 : vector<256xf32> to vector<1x256xf32>
    %103 = tpu.concatenate %7, %11, %15, %19, %23, %27, %31, %35, %39, %43, %47, %51, %54, %58, %62, %66 in 0 : vector<1x256xf32>, vector<1x256xf32>, vector<1x256xf32>, vector<1x256xf32>, vector<1x256xf32>, vector<1x256xf32>, vector<1x256xf32>, vector<1x256xf32>, vector<1x256xf32>, vector<1x256xf32>, vector<1x256xf32>, vector<1x256xf32>, vector<1x256xf32>, vector<1x256xf32>, vector<1x256xf32>, vector<1x256xf32> -> vector<16x256xf32>
    %104 = tpu.concatenate %70, %74, %78, %82, %86, %90, %94, %98, %102 in 0 : vector<1x256xf32>, vector<1x256xf32>, vector<1x256xf32>, vector<1x256xf32>, vector<1x256xf32>, vector<1x256xf32>, vector<1x256xf32>, vector<1x256xf32>, vector<1x256xf32> -> vector<9x256xf32>
    %105 = tpu.concatenate %103, %104 in 0 : vector<16x256xf32>, vector<9x256xf32> -> vector<25x256xf32>
    %c0_29 = arith.constant 0 : index
    %c0_30 = arith.constant 0 : index
    %106 = vector.load %arg3[%c0_29, %c0_30] : memref<25x256xf32, #tpu.memory_space<vmem>>, vector<25x256xf32>
    %107 = arith.mulf %105, %106 : vector<25x256xf32>
    %c0_31 = arith.constant 0 : index
    %c0_32 = arith.constant 0 : index
    %c0_33 = arith.constant 0 : index
    %108 = vector.load %arg4[%c0_31, %c0_32, %c0_33] : memref<1x25x256xf32, #tpu.memory_space<vmem>>, vector<1x25x256xf32>
    %109 = vector.shape_cast %108 : vector<1x25x256xf32> to vector<25x256xf32>
    %110 = vector.shape_cast %107 : vector<25x256xf32> to vector<1x25x256xf32>
    tpu.vector_store %arg4[%c0_31, %c0_32, %c0_33], %110 {strides = array<i32>} : memref<1x25x256xf32, #tpu.memory_space<vmem>>, vector<1x25x256xf32>,
    return
  }
  func.func @transform_0(%arg0: i32) -> (i32, i32, i32) {
    %c0_i32 = arith.constant 0 : i32
    %c0_i32_0 = arith.constant 0 : i32
    %c0_i32_1 = arith.constant 0 : i32
    return %arg0, %c0_i32, %c0_i32_0 : i32, i32, i32
  }
  func.func @transform_1(%arg0: i32) -> (i32, i32, i32) {
    %c0_i32 = arith.constant 0 : i32
    %c0_i32_0 = arith.constant 0 : i32
    %c0_i32_1 = arith.constant 0 : i32
    return %arg0, %c0_i32, %c0_i32_0 : i32, i32, i32
  }
  func.func @transform_2(%arg0: i32) -> (i32, i32) {
    %c0_i32 = arith.constant 0 : i32
    %c0_i32_0 = arith.constant 0 : i32
    %c0_i32_1 = arith.constant 0 : i32
    return %c0_i32, %c0_i32_0 : i32, i32
  }
  func.func @transform_3(%arg0: i32) -> (i32, i32, i32) {
    %c0_i32 = arith.constant 0 : i32
    %c0_i32_0 = arith.constant 0 : i32
    %c0_i32_1 = arith.constant 0 : i32
    return %arg0, %c0_i32, %c0_i32_0 : i32, i32, i32
  }
}

</mosaic_0001>

<bundles_post_ra>
// kernel: tpu_custom_call.1
= control target key start
LH: loop header
LB: loop body
LE: loop exit
PB: predicated region body
PF: predicated region fallthrough
CT: control target
= control target key end

     0   :  { %8 = vsyncpa [#allocation3], 0  ;;  %s1852_s0 = inlined_call_operand.hbm [shape: f32[2,4,256], index: 0, kind: input, shape index: {}]   ;;  %s1853_s1 = inlined_call_operand.hbm [shape: f32[2,4,256], index: 1, kind: input, shape index: {}]   ;;  %s1854_s2 = inlined_call_operand.hbm [shape: f32[25,256], index: 2, kind: input, shape index: {}]   ;;  %s1855_s3 = inlined_call_operand.vmem [shape: f32[2,25,256], index: 3, kind: output, shape index: {}]  }
   0x1   :  { %10 = vsyncpa [#allocation3 + $0x1], 0 }
   0x2   :  { %11 = vsyncpa [#allocation5], 0 }
   0x3   :  { %13 = vsyncpa [#allocation5 + $0x1], 0  ;;  %s1358_s12 = smov 0   ;;  %s1360_s13 = smov 0  }
   0x4   :  { %s1362_s14 = smov 0   ;;  %s1364_s15 = smov 0  }
   0x5 LB: > { %s1377_s16 = sadd.s32 4294967295, %s1312_s15   ;;  %p39_p0 = scmp.ne.s32.totalorder %s1304_s13, %s1300_s12  ;;  %s1312_s15 = sphi %s1364_s15, %s1870_s15   ;;  %s1308_s14 = sphi %s1362_s14, %s1869_s14   ;;  %s1304_s13 = sphi %s1360_s13, %s1868_s13   ;;  %s1300_s12 = sphi %s1358_s12, %s1867_s12  }
   0x6   : > { %p1856_p1 = scmp.eq.s32.totalorder %s1377_s16, 0  ;;  %p1090_p2 = scmp.ge.s32.totalorder %s1312_s15, 1 }
   0x7   : > { %p123_p3 = scmp.lt.s32.totalorder %s1312_s15, 3  ;;  %s1314_s19 = smov [#allocation6]  }
   0x8   : > { %p1385_p4 = por %p1856_p1, %p39_p0  ;;  %s135_s20 = sshll.u32 %s1314_s19, 4  ;;  %s136_s20 = int_to_ptr.vmem [resolvable:$true] %s135_s20 }
   0x9   : > { %p1389_p5 = pnand %p1090_p2, %p123_p3  ;;  %s1402_s22 = sadd.s32 1, %s1312_s15  }
   0xa   : > { %s1859_s17 = scalar_select %p1385_p4, 1, 0 }
   0xb   : > { %s1860_s18 = scalar_select %p1389_p5, 1, 0 }
   0xc   : > { %p1118_p6 = pneg %p1389_p5  ;;  %s26_s23 = sadd.s32 1, %s1308_s14 }
   0xd   : > { %s23_s24 = ssub.s32 %s1312_s15, %s1402_s22  ;;  %s1199_s25 = scalar_lea.vmem %s136_s20, 1024 }
   0xe   : > { %p1397_p7 = pnand %p1118_p6, %p1856_p1  ;;  %p1200_p9 = scmp.ne.s32.totalorder %s136_s20, %s1199_s25 }
   0xf   : > { %p1207_p12 = scmp.lt.s32.totalorder %s136_s20, %s136_s20  ;;  %p1208_p13 = scmp.lt.s32.totalorder %s1199_s25, %s1199_s25 }
  0x10   : > { %p1190_p8 = pneg %p1397_p7 }
  0x11   : > { %p1209_p0 = por %p1208_p13, %p1207_p12 }
  0x12   : > { %p1202_p10 = pnand %p1200_p9, %p1190_p8 }
  0x14   : > { %p1203_p11 = pneg %p1202_p10 }
  0x16   : > { %p1210_p2 = pnand %p1209_p0, %p1203_p11 }
  0x18   : > { %1213 = shalt.err (!%p1210_p2)
}
  0x19   : > { %s1315_s26 = smov 256   ;;  %s1316_s27 = smov 16  }
  0x1a   : > { %1121 = dma.hbm_to_vmem [thread:$0]  (!%p1397_p7), %s1854_s2, 1024, %s136_s20, [#allocation5], %s1315_s26, %s1315_s26, %s1316_s27  }
  0x1b   : > { %p24_p3 = scmp.eq.s32.totalorder %s23_s24, 0  ;;  %p33_p6 = scmp.ne.s32.totalorder %s1308_s14, %s1304_s13 }
  0x1c   : > { %p34_p8 = scmp.eq.s32.totalorder %s1312_s15, 0  ;;  %p1130_p9 = scmp.lt.s32.totalorder %s1312_s15, 2 }
  0x1d   : > { %s1419_s30 = scalar_select %p24_p3, %s1308_s14, %s26_s23  }
  0x1e   : > { %p35_p10 = por %p34_p8, %p33_p6  ;;  %s149_s4 = sand.u32 1, %s1308_s14  }
  0x1f   : > { %s1422_s5 = sshll.u32 %s149_s4, 3  ;;  %s1107_s6 = sshll.u32 %s1312_s15, 7 }
  0x20   : > { %s1428_s9 = scalar_lea.hbm %s1852_s0, %s1107_s6  ;;  %s153_s10 = scalar_lea.vmem [#allocation2], %s1422_s5 }
  0x21   : > { %s161_s11 = sshll.u32 %s153_s10, 4  ;;  %p1433_p7 = pnand %p1130_p9, %p35_p10  ;;  %s1431_s11 = int_to_ptr.vmem [resolvable:$true] %s161_s11 }
  0x22   : > { %s1440_s21 = scalar_lea.hbm %s1853_s1, %s1107_s6  ;;  %s168_s23 = sand.u32 1, %s1312_s15  }
  0x23   : > { %s150_s24 = scalar_lea.sflag [#allocation3], %s149_s4  ;;  %s1214_s25 = scalar_lea.hbm %s1428_s9, 128 }
  0x24   : > { %p1215_p11 = scmp.ne.s32.totalorder %s1428_s9, %s1214_s25  ;;  %p1216_p12 = pneg %p1433_p7 }
  0x25   : > { %s1219_s28 = scalar_lea.hbm %s1852_s0, 256  ;;  %p1220_p2 = scmp.lt.s32.totalorder %s1428_s9, %s1852_s0 }
  0x26   : > { %p1217_p13 = pnand %p1216_p12, %p1215_p11  ;;  %p1221_p3 = scmp.lt.s32.totalorder %s1219_s28, %s1214_s25 }
  0x28   : > { %p1218_p0 = pneg %p1217_p13  ;;  %p1222_p6 = por %p1221_p3, %p1220_p2 }
  0x2a   : > { %p1223_p8 = pnand %p1222_p6, %p1218_p0 }
  0x2c   : > { %1226 = shalt.err (!%p1223_p8)
}
  0x2d   : > { %s1227_s4 = scalar_lea.vmem %s1431_s11, 128  ;;  %s1317_s6 = smov [#allocation2]  }
  0x2e   : > { %p1228_p9 = scmp.ne.s32.totalorder %s1431_s11, %s1227_s4  ;;  %s1232_s8 = sshll.u32 %s1317_s6, 4  ;;  %s1233_s8 = int_to_ptr.vmem [resolvable:$false] %s1232_s8 }
  0x2f   : > { %s1234_s10 = scalar_lea.vmem %s1233_s8, 256  ;;  %p1235_p13 = scmp.lt.s32.totalorder %s1431_s11, %s1233_s8 }
  0x30   : > { %p1230_p10 = pnand %p1228_p9, %p1216_p12  ;;  %p1236_p1 = scmp.lt.s32.totalorder %s1234_s10, %s1227_s4 }
  0x32   : > { %p1231_p11 = pneg %p1230_p10  ;;  %p1237_p4 = por %p1236_p1, %p1235_p13 }
  0x34   : > { %p1238_p2 = pnand %p1237_p4, %p1231_p11 }
  0x36   : > { %1241 = shalt.err (!%p1238_p2)
}
  0x37   : > { %1125 = dma.hbm_to_vmem [thread:$0]  (!%p1433_p7), %s1428_s9, 128, %s1431_s11, %s150_s24  }
  0x38   : > { %s172_s19 = scalar_lea.vmem [#allocation4], %s1422_s5  ;;  %s169_s25 = scalar_lea.sflag [#allocation5], %s168_s23 }
  0x39   : > { %s180_s20 = sshll.u32 %s172_s19, 4  ;;  %s1242_s26 = scalar_lea.hbm %s1440_s21, 128  ;;  %s181_s20 = int_to_ptr.vmem [resolvable:$true] %s180_s20 }
  0x3a   : > { %p1243_p1 = scmp.ne.s32.totalorder %s1440_s21, %s1242_s26  ;;  %s1247_s29 = scalar_lea.hbm %s1853_s1, 256 }
  0x3b   : > { %p1248_p3 = scmp.lt.s32.totalorder %s1440_s21, %s1853_s1  ;;  %p1249_p6 = scmp.lt.s32.totalorder %s1247_s29, %s1242_s26 }
  0x3c   : > { %p1245_p4 = pnand %p1243_p1, %p1216_p12 }
  0x3d   : > { %p1250_p8 = por %p1249_p6, %p1248_p3 }
  0x3e   : > { %p1246_p0 = pneg %p1245_p4 }
  0x40   : > { %p1251_p9 = pnand %p1250_p8, %p1246_p0 }
  0x42   : > { %1254 = shalt.err (!%p1251_p9)
}
  0x43   : > { %s1255_s15 = scalar_lea.vmem %s181_s20, 128  ;;  %s1318_s5 = smov [#allocation4]  }
  0x44   : > { %p1256_p10 = scmp.ne.s32.totalorder %s181_s20, %s1255_s15  ;;  %s1260_s9 = sshll.u32 %s1318_s5, 4  ;;  %s1261_s9 = int_to_ptr.vmem [resolvable:$false] %s1260_s9 }
  0x45   : > { %s1262_s11 = scalar_lea.vmem %s1261_s9, 256  ;;  %p1263_p2 = scmp.lt.s32.totalorder %s181_s20, %s1261_s9 }
  0x46   : > { %p1258_p11 = pnand %p1256_p10, %p1216_p12  ;;  %p1264_p1 = scmp.lt.s32.totalorder %s1262_s11, %s1255_s15 }
  0x48   : > { %p1259_p13 = pneg %p1258_p11  ;;  %p1265_p4 = por %p1264_p1, %p1263_p2 }
  0x4a   : > { %p1266_p5 = pnand %p1265_p4, %p1259_p13 }
  0x4c   : > { %1269 = shalt.err (!%p1266_p5)
}
  0x4d   : > { %1128 = dma.hbm_to_vmem [thread:$0]  (!%p1433_p7), %s1440_s21, 128, %s181_s20, %s169_s25  }
  0x4e   : > { %p1863_p0 = scmp.ne.s32.totalorder %s1860_s18, 0 }
  0x4f   : > { %s191_s23 = sand.u32 (!%p1863_p0), 1, %s1304_s13   ;;  %p1864_p12 = scmp.ne.s32.totalorder (!%p1863_p0), %s1859_s17, 0 }
  0x50   : > { %189 = sbr.rel (%p1863_p0) target bundleno = 346 (0x15a), region = 32  ;;  %s1491_s24 = sshll.u32 (!%p1863_p0), %s191_s23, 3 }
  0x51   : > { %s192_s6 = scalar_lea.sflag (!%p1863_p0), [#allocation3], %s191_s23  ;;  %s195_s8 = scalar_lea.vmem (!%p1863_p0), [#allocation2], %s1491_s24 }
  0x55   : > { %1287 = dma.done.wait (%p1864_p12), %s192_s6, 128  }
  0x56   : > { %1289 = vsyncadd (%p1864_p12), %s192_s6, 4294967168  ;;  %s200_s12 = sand.u32 1, %s1377_s16   ;;  %s204_s18 = scalar_lea.vmem [#allocation4], %s1491_s24 }
  0x57   : > { %s201_s21 = scalar_lea.sflag [#allocation5], %s200_s12 }
  0x58   : > { %1291 = dma.done.wait (%p1864_p12), %s201_s21, 128  }
  0x59   : > { %1293 = vsyncadd (%p1864_p12), %s201_s21, 4294967168  ;;  %p1865_p5 = scmp.eq.s32.totalorder %s1377_s16, 0 }
  0x5b   : > { %1295 = dma.done.wait (%p1865_p5), [#allocation5], 1024   ;;  %p1866_p7 = pmov %p1865_p5 }
  0x5c   : > { %v242_v0 = vld [vmem:[%s204_s18] sm:$0xff]  ;;  %s1319_s10 = smov 66   ;;  %s1320_s19 = smov 68   ;;  %v1510_v2 = vld [vmem:[%s195_s8] sm:$0xff]  ;;  %v250_v4 = vlaneseq  ;;  %vm263_vm0 = vcmask 1043456   ;;  %vm918_vm8 = vcmask 1040384  }
  0x5d   : > { %1297 = vsyncadd (%p1866_p7), [#allocation5], 4294966272  ;;  %278 = vrot.lane.b32.xlu1 %v242_v0, %s1319_s10  ;;  %246 = vrot.lane.b32.xlu0 %v242_v0, %s1320_s19  ;;  %v244_v1 = vcombine.high %v242_v0, %v242_v0  ;;  %s1321_s20 = smov 30   ;;  %s1322_s25 = smov 28   ;;  %v597_v3 = vmul.f32 %v242_v0, %v1510_v2  ;;  %vm921_vm14 = vcmask 1041408  }
  0x5e   : > { %s1323_s17 = smov 98   ;;  %s1324_s26 = smov 96   ;;  %v1513_v6 = vand.u32 127, %v250_v4 }
  0x5f   : > { %s1325_s27 = smov 64   ;;  %s1326_s28 = smov 4   ;;  %v599_v5 = vcombine.high %v597_v3, %v597_v3  ;;  %v601_v9 = vsel %vm263_vm0, %v597_v3, 0.0 }
  0x60   : > { %s1327_s29 = smov 94   ;;  %s1328_s7 = smov 62   ;;  %vm282_vm1 = vcmp.lt.s32.totalorder %v1513_v6, 66  ;;  %v602_v13 = vrot.slane %v601_v9, 4  ;;  %vm485_vm2 = vcmp.lt.s32.totalorder %v1513_v6, 30  ;;  %vm252_vm3 = vcmp.lt.s32.totalorder %v1513_v6, 68 }
  0x61   : > { %481 = vrot.lane.b32.xlu0 %v242_v0, %s1321_s20  ;;  %280 = vrot.lane.b32.xlu1 %v244_v1, %s1319_s10  ;;  %s1329_s4 = smov 2   ;;  %s1330_s15 = smov 92   ;;  %v608_v10 = vsel %vm263_vm0, %v599_v5, 0.0  ;;  %vm514_vm4 = vcmp.lt.s32.totalorder %v1513_v6, 28  ;;  %vm706_vm5 = vcmp.lt.s32.totalorder %v1513_v6, 98  ;;  %vm735_vm6 = vcmp.lt.s32.totalorder %v1513_v6, 96 }
  0x62   : > { %s1331_s5 = smov 60   ;;  %s1332_s9 = smov 36   ;;  %v609_v14 = vrot.slane %v608_v10, 4  ;;  %v603_v23 = vadd.f32 %v602_v13, %v601_v9  ;;  %vm311_vm7 = vcmp.lt.s32.totalorder %v1513_v6, 64  ;;  %vm543_vm9 = vcmp.lt.s32.totalorder %v1513_v6, 4 }
  0x63   : > { %s1333_s11 = smov 126   ;;  %s1334_s23 = smov 34   ;;  %vm764_vm10 = vcmp.lt.s32.totalorder %v1513_v6, 94  ;;  %vm340_vm11 = vcmp.lt.s32.totalorder %v1513_v6, 62  ;;  %vm572_vm12 = vcmp.lt.s32.totalorder %v1513_v6, 2  ;;  %vm793_vm13 = vcmp.lt.s32.totalorder %v1513_v6, 92 }
  0x64   : > { %s1335_s6 = smov 124   ;;  %s1336_s12 = smov 32   ;;  %v610_v24 = vadd.f32 %v609_v14, %v608_v10  ;;  %v604_v42 = vrot.slane %v603_v23, 2  ;;  %vm369_vm15 = vcmp.lt.s32.totalorder %v1513_v6, 60 }
  0x65   : > { %483 = vrot.lane.b32.xlu1 %v244_v1, %s1321_s20  ;;  %248 = vrot.lane.b32.xlu0 %v244_v1, %s1320_s19  ;;  %s1337_s21 = smov 100   ;;  %p236_p3 = scmp.lt.s32.totalorder %s1377_s16, 1 }
  0x66   : > { %v611_v49 = vrot.slane %v610_v24, 2  ;;  %v605_v56 = vadd.f32 %v604_v42, %v603_v23 }
  0x67   : > { %s1872_s16 = smov (!%p236_p3, %s1377_s16), 1 }
  0x68   : > { %v612_v61 = vadd.f32 %v611_v49, %v610_v24  ;;  %s1109_s18 = sshll.u32 %s1872_s16, 6 }
  0x69   : > { %512 = vrot.lane.b32.xlu1 %v244_v1, %s1322_s25  ;;  %510 = vrot.lane.b32.xlu0 %v242_v0, %s1322_s25  ;;  %s1737_s19 = scalar_lea.vmem %s1855_s3, %s1109_s18 }
  0x6a   : > { %v613_v13 = vrot.slane %v612_v61, 1 }
  0x6d   : > { %704 = vrot.lane.b32.xlu1 %v244_v1, %s1323_s17  ;;  %702 = vrot.lane.b32.xlu0 %v242_v0, %s1323_s17 }
  0x71   : > { %733 = vrot.lane.b32.xlu1 %v244_v1, %s1324_s26  ;;  %731 = vrot.lane.b32.xlu0 %v242_v0, %s1324_s26 }
  0x75   : > { %309 = vrot.lane.b32.xlu1 %v244_v1, %s1325_s27  ;;  %307 = vrot.lane.b32.xlu0 %v242_v0, %s1325_s27 }
  0x79   : > { %541 = vrot.lane.b32.xlu1 %v244_v1, %s1326_s28  ;;  %539 = vrot.lane.b32.xlu0 %v242_v0, %s1326_s28 }
  0x7d   : > { %762 = vrot.lane.b32.xlu1 %v244_v1, %s1327_s29  ;;  %760 = vrot.lane.b32.xlu0 %v242_v0, %s1327_s29 }
  0x81   : > { %338 = vrot.lane.b32.xlu1 %v244_v1, %s1328_s7  ;;  %336 = vrot.lane.b32.xlu0 %v242_v0, %s1328_s7 }
  0x85   : > { %570 = vrot.lane.b32.xlu1 %v244_v1, %s1329_s4  ;;  %568 = vrot.lane.b32.xlu0 %v242_v0, %s1329_s4 }
  0x89   : > { %791 = vrot.lane.b32.xlu1 %v244_v1, %s1330_s15  ;;  %789 = vrot.lane.b32.xlu0 %v242_v0, %s1330_s15 }
  0x8d   : > { %367 = vrot.lane.b32.xlu1 %v244_v1, %s1331_s5  ;;  %365 = vrot.lane.b32.xlu0 %v242_v0, %s1331_s5 }
  0x91   : > { %396 = vrot.lane.b32.xlu1 %v244_v1, %s1332_s9  ;;  %394 = vrot.lane.b32.xlu0 %v242_v0, %s1332_s9 }
  0x95   : > { %617 = vrot.lane.b32.xlu1 %v244_v1, %s1333_s11  ;;  %615 = vrot.lane.b32.xlu0 %v242_v0, %s1333_s11 }
  0x99   : > { %425 = vrot.lane.b32.xlu1 %v244_v1, %s1334_s23  ;;  %423 = vrot.lane.b32.xlu0 %v242_v0, %s1334_s23 }
  0x9d   : > { %646 = vrot.lane.b32.xlu1 %v244_v1, %s1335_s6  ;;  %644 = vrot.lane.b32.xlu0 %v242_v0, %s1335_s6 }
  0xa1   : > { %454 = vrot.lane.b32.xlu1 %v244_v1, %s1336_s12  ;;  %452 = vrot.lane.b32.xlu0 %v242_v0, %s1336_s12 }
  0xa5   : > { %675 = vrot.lane.b32.xlu1 %v244_v1, %s1337_s21  ;;  %673 = vrot.lane.b32.xlu0 %v242_v0, %s1337_s21 }
  0xcf   : > { %v279_v7 = vpop.permute.xlu1 %278  ;;  %v247_v8 = vpop.permute.xlu0 %246 }
  0xd3   : > { %v482_v11 = vpop.permute.xlu0 %481  ;;  %v281_v12 = vpop.permute.xlu1 %280 }
  0xd4   : > { %v283_v15 = vsel %vm282_vm1, %v279_v7, %v281_v12  ;;  %v284_v16 = vsel %vm282_vm1, %v281_v12, %v279_v7  ;;  %vm398_vm1 = vcmp.lt.s32.totalorder %v1513_v6, 36 }
  0xd5   : > { %v287_v17 = vcombine.low %v284_v16, %v283_v15  ;;  %v838_v18 = vcombine.low %v283_v15, %v284_v16 }
  0xd7   : > { %v289_v19 = vmul.f32 %v287_v17, %v1510_v2  ;;  %v840_v20 = vmul.f32 %v838_v18, %v1510_v2  ;;  %v484_v21 = vpop.permute.xlu1 %483  ;;  %v249_v22 = vpop.permute.xlu0 %248 }
  0xd8   : > { %v486_v25 = vsel %vm485_vm2, %v482_v11, %v484_v21  ;;  %v487_v26 = vsel %vm485_vm2, %v484_v21, %v482_v11  ;;  %v253_v27 = vsel %vm252_vm3, %v247_v8, %v249_v22  ;;  %v254_v28 = vsel %vm252_vm3, %v249_v22, %v247_v8 }
  0xd9   : > { %v291_v29 = vcombine.high %v289_v19, %v289_v19  ;;  %v293_v30 = vsel %vm263_vm0, %v289_v19, 0.0  ;;  %v842_v31 = vcombine.high %v840_v20, %v840_v20  ;;  %v844_v32 = vsel %vm263_vm0, %v840_v20, 0.0 }
  0xda   : > { %v294_v33 = vrot.slane %v293_v30, 4  ;;  %v845_v34 = vrot.slane %v844_v32, 4  ;;  %v490_v35 = vcombine.low %v487_v26, %v486_v25  ;;  %v257_v36 = vcombine.low %v254_v28, %v253_v27 }
  0xdb   : > { %v300_v37 = vsel %vm263_vm0, %v291_v29, 0.0  ;;  %v851_v38 = vsel %vm263_vm0, %v842_v31, 0.0  ;;  %v513_v39 = vpop.permute.xlu1 %512  ;;  %v511_v40 = vpop.permute.xlu0 %510  ;;  %v818_v55 = vcombine.low %v253_v27, %v254_v28  ;;  %v606_v8 = vrot.slane %v605_v56, 1 }
  0xdc   : > { %v295_v41 = vadd.f32 %v294_v33, %v293_v30  ;;  %v301_v43 = vrot.slane %v300_v37, 4  ;;  %v492_v44 = vmul.f32 %v490_v35, %v1510_v2  ;;  %v259_v45 = vmul.f32 %v257_v36, %v1510_v2 }
  0xdd   : > { %v515_v46 = vsel %vm514_vm4, %v511_v40, %v513_v39  ;;  %v846_v47 = vadd.f32 %v845_v34, %v844_v32  ;;  %v852_v48 = vrot.slane %v851_v38, 4  ;;  %v820_v11 = vmul.f32 %v818_v55, %v1510_v2 }
  0xde   : > { %v494_v50 = vcombine.high %v492_v44, %v492_v44  ;;  %v496_v51 = vsel %vm263_vm0, %v492_v44, 0.0  ;;  %v261_v52 = vcombine.high %v259_v45, %v259_v45  ;;  %v264_v53 = vsel %vm263_vm0, %v259_v45, 0.0 }
  0xdf   : > { %v296_v54 = vrot.slane %v295_v41, 2  ;;  %v302_v57 = vadd.f32 %v301_v43, %v300_v37  ;;  %v497_v58 = vrot.slane %v496_v51, 4  ;;  %v265_v60 = vrot.slane %v264_v53, 4  ;;  %v705_v5 = vpop.permute.xlu1 %704  ;;  %v703_v7 = vpop.permute.xlu0 %702 }
  0xe0   : > { %v503_v59 = vsel %vm263_vm0, %v494_v50, 0.0  ;;  %v847_v62 = vrot.slane %v846_v47, 2  ;;  %v853_v63 = vadd.f32 %v852_v48, %v851_v38  ;;  %v271_v1 = vsel %vm263_vm0, %v261_v52, 0.0 }
  0xe1   : > { %v498_v0 = vadd.f32 %v497_v58, %v496_v51  ;;  %v297_v3 = vadd.f32 %v296_v54, %v295_v41  ;;  %v504_v4 = vrot.slane %v503_v59, 4  ;;  %v303_v9 = vrot.slane %v302_v57, 2 }
  0xe2   : > { %v266_v10 = vadd.f32 %v265_v60, %v264_v53  ;;  %v272_v12 = vrot.slane %v271_v1, 4  ;;  %v1537_v14 = vadd.f32 %v847_v62, %v846_v47  ;;  %v854_v15 = vrot.slane %v853_v63, 2 }
  0xe3   : > { %v499_v16 = vrot.slane %v498_v0, 2  ;;  %v298_v17 = vrot.slane %v297_v3, 1  ;;  %v505_v18 = vadd.f32 %v504_v4, %v503_v59  ;;  %v516_v19 = vsel %vm514_vm4, %v513_v39, %v511_v40  ;;  %v734_v28 = vpop.permute.xlu1 %733  ;;  %v732_v29 = vpop.permute.xlu0 %731 }
  0xe4   : > { %v1542_v20 = vadd.f32 %v606_v8, %v605_v56  ;;  %v1544_v21 = vadd.f32 %v303_v9, %v302_v57  ;;  %v267_v22 = vrot.slane %v266_v10, 2  ;;  %v822_v23 = vcombine.high %v820_v11, %v820_v11 }
  0xe5   : > { %v707_v24 = vsel %vm706_vm5, %v703_v7, %v705_v5  ;;  %v273_v25 = vadd.f32 %v272_v12, %v271_v1  ;;  %v519_v26 = vcombine.low %v516_v19, %v515_v46  ;;  %v708_v27 = vsel %vm706_vm5, %v705_v5, %v703_v7 }
  0xe6   : > { %v1551_v30 = vadd.f32 %v613_v13, %v612_v61  ;;  %v849_v31 = vrot.slane %v1537_v14, 1  ;;  %v1554_v32 = vadd.f32 %v854_v15, %v853_v63  ;;  %v500_v33 = vadd.f32 %v499_v16, %v498_v0 }
  0xe7   : > { %v824_v34 = vsel %vm263_vm0, %v820_v11, 0.0  ;;  %v1557_v35 = vadd.f32 %v298_v17, %v297_v3  ;;  %v506_v36 = vrot.slane %v505_v18, 2  ;;  %v521_v37 = vmul.f32 %v519_v26, %v1510_v2  ;;  %v310_v59 = vpop.permute.xlu1 %309  ;;  %v308_v60 = vpop.permute.xlu0 %307 }
  0xe8   : > { %v711_v38 = vcombine.low %v707_v24, %v708_v27  ;;  %v305_v39 = vrot.slane %v1544_v21, 1  ;;  %v1561_v40 = vadd.f32 %v267_v22, %v266_v10  ;;  %v831_v41 = vsel %vm263_vm0, %v822_v23, 0.0 }
  0xe9   : > { %v736_v42 = vsel %vm735_vm6, %v732_v29, %v734_v28  ;;  %v274_v43 = vrot.slane %v273_v25, 2  ;;  %v825_v44 = vrot.slane %v824_v34, 4  ;;  %v523_v45 = vcombine.high %v521_v37, %v521_v37 }
  0xea   : > { %v525_v46 = vsel %vm263_vm0, %v521_v37, 0.0  ;;  %v501_v47 = vrot.slane %v500_v33, 1  ;;  %v713_v49 = vmul.f32 %v711_v38, %v1510_v2  ;;  %v737_v50 = vsel %vm735_vm6, %v734_v28, %v732_v29 }
  0xeb   : > { %v526_v48 = vrot.slane %v525_v46, 4  ;;  %v507_v51 = vadd.f32 %v506_v36, %v505_v18  ;;  %v832_v52 = vrot.slane %v831_v41, 4  ;;  %v532_v53 = vsel %vm263_vm0, %v523_v45, 0.0  ;;  %v542_v45 = vpop.permute.xlu1 %541 }
  0xec   : > { %v740_v54 = vcombine.low %v736_v42, %v737_v50  ;;  %v533_v56 = vrot.slane %v532_v53, 4  ;;  %v715_v57 = vcombine.high %v713_v49, %v713_v49  ;;  %v717_v58 = vsel %vm263_vm0, %v713_v49, 0.0 }
  0xed   : > { %v527_v55 = vadd.f32 %v526_v48, %v525_v46  ;;  %v269_v61 = vrot.slane %v1561_v40, 1  ;;  %v275_v62 = vadd.f32 %v274_v43, %v273_v25  ;;  %v718_v63 = vrot.slane %v717_v58, 4  ;;  %v540_v46 = vpop.permute.xlu0 %539 }
  0xee   : > { %v742_v0 = vmul.f32 %v740_v54, %v1510_v2  ;;  %v826_v1 = vadd.f32 %v825_v44, %v824_v34  ;;  %v534_v4 = vadd.f32 %v533_v56, %v532_v53  ;;  %v724_v5 = vsel %vm263_vm0, %v715_v57, 0.0 }
  0xef   : > { %v528_v3 = vrot.slane %v527_v55, 2  ;;  %v833_v7 = vadd.f32 %v832_v52, %v831_v41  ;;  %v725_v8 = vrot.slane %v724_v5, 4  ;;  %v312_v10 = vsel %vm311_vm7, %v308_v60, %v310_v59 }
  0xf0   : > { %v744_v9 = vcombine.high %v742_v0, %v742_v0  ;;  %v535_v12 = vrot.slane %v534_v4, 2  ;;  %v746_v13 = vsel %vm263_vm0, %v742_v0, 0.0  ;;  %v313_v15 = vsel %vm311_vm7, %v310_v59, %v308_v60 }
  0xf1   : > { %v529_v11 = vadd.f32 %v528_v3, %v527_v55  ;;  %v508_v16 = vrot.slane %v507_v51, 1  ;;  %v719_v17 = vadd.f32 %v718_v63, %v717_v58  ;;  %v726_v18 = vadd.f32 %v725_v8, %v724_v5  ;;  %v761_v3 = vpop.permute.xlu0 %760 }
  0xf2   : > { %v747_v19 = vrot.slane %v746_v13, 4  ;;  %v536_v23 = vadd.f32 %v535_v12, %v534_v4  ;;  %v753_v24 = vsel %vm263_vm0, %v744_v9, 0.0  ;;  %v316_v25 = vcombine.low %v313_v15, %v312_v10 }
  0xf3   : > { %v530_v22 = vrot.slane %v529_v11, 1  ;;  %v502_v26 = vadd.f32 %v501_v47, %v500_v33  ;;  %v276_v27 = vrot.slane %v275_v62, 1  ;;  %v827_v28 = vrot.slane %v826_v1, 2 }
  0xf4   : > { %v858_v29 = vcombine.low %v312_v10, %v313_v15  ;;  %v834_v34 = vrot.slane %v833_v7, 2  ;;  %v537_v37 = vrot.slane %v536_v23, 1  ;;  %v318_v38 = vmul.f32 %v316_v25, %v1510_v2 }
  0xf5   : > { %v531_v36 = vadd.f32 %v530_v22, %v529_v11  ;;  %v509_v41 = vadd.f32 %v508_v16, %v507_v51  ;;  %v720_v42 = vrot.slane %v719_v17, 2  ;;  %v727_v43 = vrot.slane %v726_v18, 2 }
  0xf6   : > { %v754_v44 = vrot.slane %v753_v24, 4  ;;  %v538_v48 = vadd.f32 %v537_v37, %v536_v23  ;;  %v748_v33 = vadd.f32 %v747_v19, %v746_v13  ;;  %v320_v47 = vcombine.high %v318_v38, %v318_v38 }
  0xf7   : > { %v1585_v49 = vsel %vm918_vm8, %v502_v26, %v531_v36  ;;  %v856_v50 = vrot.slane %v1554_v32, 1  ;;  %v270_v52 = vadd.f32 %v269_v61, %v1561_v40  ;;  %v277_v53 = vadd.f32 %v276_v27, %v275_v62  ;;  %v337_v36 = vpop.permute.xlu0 %336 }
  0xf8   : > { %v860_v54 = vmul.f32 %v858_v29, %v1510_v2  ;;  %v828_v55 = vadd.f32 %v827_v28, %v826_v1  ;;  %v835_v51 = vadd.f32 %v834_v34, %v833_v7  ;;  %v1591_v56 = vsel %vm918_vm8, %v509_v41, %v538_v48 }
  0xf9   : > { %v322_v57 = vsel %vm263_vm0, %v318_v38, 0.0  ;;  %v306_v58 = vadd.f32 %v305_v39, %v1544_v21  ;;  %v1600_v59 = vadd.f32 %v849_v31, %v1537_v14  ;;  %v721_v40 = vadd.f32 %v720_v42, %v719_v17  ;;  %v763_v39 = vpop.permute.xlu1 %762 }
  0xfa   : > { %v755_v60 = vadd.f32 %v754_v44, %v753_v24  ;;  %v728_v61 = vadd.f32 %v727_v43, %v726_v18  ;;  %v749_v62 = vrot.slane %v748_v33, 2  ;;  %v329_v63 = vsel %vm263_vm0, %v320_v47, 0.0 }
  0xfb   : > { %v544_v0 = vsel %vm543_vm9, %v540_v46, %v542_v45  ;;  %v1607_v1 = vadd.f32 %v856_v50, %v1554_v32  ;;  %v1611_v21 = vsel %vm918_vm8, %v270_v52, %v1557_v35  ;;  %v323_v14 = vrot.slane %v322_v57, 4 }
  0xfc   : > { %v862_v31 = vcombine.high %v860_v54, %v860_v54  ;;  %v829_v4 = vrot.slane %v828_v55, 1  ;;  %v836_v5 = vrot.slane %v835_v51, 1  ;;  %v1614_v7 = vsel %vm918_vm8, %v277_v53, %v306_v58 }
  0xfd   : > { %v545_v8 = vsel %vm543_vm9, %v542_v45, %v540_v46  ;;  %v756_v9 = vrot.slane %v755_v60, 2  ;;  %v330_v10 = vrot.slane %v329_v63, 4  ;;  %v864_v32 = vsel %vm263_vm0, %v860_v54, 0.0  ;;  %v339_v34 = vpop.permute.xlu1 %338 }
  0xfe   : > { %v548_v11 = vcombine.low %v545_v8, %v544_v0  ;;  %v722_v12 = vrot.slane %v721_v40, 1  ;;  %v729_v35 = vrot.slane %v728_v61, 1  ;;  %v750_v13 = vadd.f32 %v749_v62, %v748_v33 }
  0xff   : > { %v765_v15 = vsel %vm764_vm10, %v761_v3, %v763_v39  ;;  %v324_v16 = vadd.f32 %v323_v14, %v322_v57  ;;  %v871_v17 = vsel %vm263_vm0, %v862_v31, 0.0  ;;  %v766_v19 = vsel %vm764_vm10, %v763_v39, %v761_v3  ;;  %v569_v14 = vpop.permute.xlu0 %568 }
 0x100   : > { %v550_v18 = vmul.f32 %v548_v11, %v1510_v2  ;;  %v1625_v22 = vadd.f32 %v829_v4, %v828_v55  ;;  %v1627_v23 = vadd.f32 %v836_v5, %v835_v51  ;;  %v865_v24 = vrot.slane %v864_v32, 4 }
 0x101   : > { %v769_v25 = vcombine.low %v765_v15, %v766_v19  ;;  %v757_v26 = vadd.f32 %v756_v9, %v755_v60  ;;  %v331_v27 = vadd.f32 %v330_v10, %v329_v63  ;;  %v751_v37 = vrot.slane %v750_v13, 1  ;;  %v571_v0 = vpop.permute.xlu1 %570 }
 0x102   : > { %v552_v28 = vcombine.high %v550_v18, %v550_v18  ;;  %v554_v29 = vsel %vm263_vm0, %v550_v18, 0.0  ;;  %v872_v38 = vrot.slane %v871_v17, 4  ;;  %v723_v43 = vadd.f32 %v722_v12, %v721_v40 }
 0x103   : > { %v555_v41 = vrot.slane %v554_v29, 4  ;;  %v771_v42 = vmul.f32 %v769_v25, %v1510_v2  ;;  %v1631_v44 = vadd.f32 %v729_v35, %v728_v61  ;;  %v325_v45 = vrot.slane %v324_v16, 2 }
 0x104   : > { %v561_v46 = vsel %vm263_vm0, %v552_v28, 0.0  ;;  %v866_v48 = vadd.f32 %v865_v24, %v864_v32  ;;  %v341_v47 = vsel %vm340_vm11, %v337_v36, %v339_v34  ;;  %v342_v50 = vsel %vm340_vm11, %v339_v34, %v337_v36 }
 0x105   : > { %v562_v33 = vrot.slane %v561_v46, 4  ;;  %v332_v52 = vrot.slane %v331_v27, 2  ;;  %v556_v53 = vadd.f32 %v555_v41, %v554_v29  ;;  %v773_v54 = vcombine.high %v771_v42, %v771_v42  ;;  %v792_v36 = vpop.permute.xlu1 %791 }
 0x106   : > { %v775_v55 = vsel %vm263_vm0, %v771_v42, 0.0  ;;  %v752_v51 = vadd.f32 %v751_v37, %v750_v13  ;;  %v758_v57 = vrot.slane %v757_v26, 1  ;;  %v873_v58 = vadd.f32 %v872_v38, %v871_v17 }
 0x107   : > { %v776_v40 = vrot.slane %v775_v55, 4  ;;  %v563_v60 = vadd.f32 %v562_v33, %v561_v46  ;;  %v782_v61 = vsel %vm263_vm0, %v773_v54, 0.0  ;;  %v345_v62 = vcombine.low %v342_v50, %v341_v47 }
 0x108   : > { %v878_v63 = vcombine.low %v341_v47, %v342_v50  ;;  %v326_v31 = vadd.f32 %v325_v45, %v324_v16  ;;  %v867_v39 = vrot.slane %v866_v48, 2  ;;  %v783_v4 = vrot.slane %v782_v61, 4 }
 0x109   : > { %v777_v3 = vadd.f32 %v776_v40, %v775_v55  ;;  %v333_v5 = vadd.f32 %v332_v52, %v331_v27  ;;  %v557_v8 = vrot.slane %v556_v53, 2  ;;  %v347_v9 = vmul.f32 %v345_v62, %v1510_v2 }
 0x10a   : > { %v880_v10 = vmul.f32 %v878_v63, %v1510_v2  ;;  %v759_v32 = vadd.f32 %v758_v57, %v757_v26  ;;  %v874_v11 = vrot.slane %v873_v58, 2  ;;  %v784_v35 = vadd.f32 %v783_v4, %v782_v61  ;;  %v790_v26 = vpop.permute.xlu0 %789 }
 0x10b   : > { %v778_v12 = vrot.slane %v777_v3, 2  ;;  %v564_v13 = vrot.slane %v563_v60, 2  ;;  %v349_v15 = vcombine.high %v347_v9, %v347_v9  ;;  %v351_v17 = vsel %vm263_vm0, %v347_v9, 0.0 }
 0x10c   : > { %v882_v18 = vcombine.high %v880_v10, %v880_v10  ;;  %v327_v16 = vrot.slane %v326_v31, 1  ;;  %v868_v19 = vadd.f32 %v867_v39, %v866_v48  ;;  %v785_v24 = vrot.slane %v784_v35, 2 }
 0x10d   : > { %v884_v25 = vsel %vm263_vm0, %v880_v10, 0.0  ;;  %v334_v27 = vrot.slane %v333_v5, 1  ;;  %v558_v28 = vadd.f32 %v557_v8, %v556_v53  ;;  %v779_v29 = vadd.f32 %v778_v12, %v777_v3 }
 0x10e   : > { %v891_v34 = vsel %vm263_vm0, %v882_v18, 0.0  ;;  %v875_v37 = vadd.f32 %v874_v11, %v873_v58  ;;  %v352_v38 = vrot.slane %v351_v17, 4  ;;  %v573_v41 = vsel %vm572_vm12, %v569_v14, %v571_v0 }
 0x10f   : > { %v574_v42 = vsel %vm572_vm12, %v571_v0, %v569_v14  ;;  %v565_v45 = vadd.f32 %v564_v13, %v563_v60  ;;  %v786_v46 = vadd.f32 %v785_v24, %v784_v35  ;;  %v358_v48 = vsel %vm263_vm0, %v349_v15, 0.0 }
 0x110   : > { %v885_v33 = vrot.slane %v884_v25, 4  ;;  %v952_v47 = vsel %vm918_vm8, %v723_v43, %v752_v51  ;;  %v328_v50 = vadd.f32 %v327_v16, %v326_v31  ;;  %v869_v52 = vrot.slane %v868_v19, 1  ;;  %v368_v43 = vpop.permute.xlu1 %367  ;;  %v366_v51 = vpop.permute.xlu0 %365 }
 0x111   : > { %v892_v53 = vrot.slane %v891_v34, 4  ;;  %v559_v54 = vrot.slane %v558_v28, 1  ;;  %v780_v55 = vrot.slane %v779_v29, 1  ;;  %v577_v57 = vcombine.low %v574_v42, %v573_v41 }
 0x112   : > { %v794_v58 = vsel %vm793_vm13, %v790_v26, %v792_v36  ;;  %v335_v40 = vadd.f32 %v334_v27, %v333_v5  ;;  %v353_v61 = vadd.f32 %v352_v38, %v351_v17  ;;  %v359_v62 = vrot.slane %v358_v48, 4 }
 0x113   : > { %v795_v60 = vsel %vm793_vm13, %v792_v36, %v790_v26  ;;  %v876_v63 = vrot.slane %v875_v37, 1  ;;  %v566_v0 = vrot.slane %v565_v45, 1  ;;  %v787_v14 = vrot.slane %v786_v46, 1 }
 0x114   : > { %v886_v39 = vadd.f32 %v885_v33, %v884_v25  ;;  %v953_v31 = vsel %vm918_vm8, %v1631_v44, %v759_v32  ;;  %v1662_v3 = vsel %vm921_vm14, %v1611_v21, %v328_v50  ;;  %v893_v4 = vadd.f32 %v892_v53, %v891_v34  ;;  %v395_v34 = vpop.permute.xlu0 %394 }
 0x115   : > { %v798_v5 = vcombine.low %v794_v58, %v795_v60  ;;  %v1665_v8 = vadd.f32 %v869_v52, %v868_v19  ;;  %v560_v9 = vadd.f32 %v559_v54, %v558_v28  ;;  %v781_v10 = vadd.f32 %v780_v55, %v779_v29  ;;  %v397_v29 = vpop.permute.xlu1 %396 }
 0x116   : > { %v579_v11 = vmul.f32 %v577_v57, %v1510_v2  ;;  %v1670_v12 = vsel %vm921_vm14, %v1614_v7, %v335_v40  ;;  %v354_v35 = vrot.slane %v353_v61, 2  ;;  %v360_v44 = vadd.f32 %v359_v62, %v358_v48 }
 0x117   : > { %v800_v32 = vmul.f32 %v798_v5, %v1510_v2  ;;  %v1673_v21 = vadd.f32 %v876_v63, %v875_v37  ;;  %v1675_v13 = vadd.f32 %v566_v0, %v565_v45  ;;  %v788_v15 = vadd.f32 %v787_v14, %v786_v46 }
 0x118   : > { %v887_v17 = vrot.slane %v886_v39, 2  ;;  %v894_v18 = vrot.slane %v893_v4, 2  ;;  %v370_v24 = vsel %vm369_vm15, %v366_v51, %v368_v43  ;;  %v1682_v7 = vsel %vm921_vm14, %v1585_v49, %v560_v9  ;;  %v1705_v14 = vpop.permute.xlu0 %615 }
 0x119   : > { %v802_v16 = vcombine.high %v800_v32, %v800_v32  ;;  %v804_v19 = vsel %vm263_vm0, %v800_v32, 0.0  ;;  %v954_v25 = vsel %vm921_vm14, %v952_v47, %v781_v10  ;;  %v581_v27 = vcombine.high %v579_v11, %v579_v11  ;;  %v1703_v0 = vpop.permute.xlu1 %617 }
 0x11a   : > { %v805_v28 = vrot.slane %v804_v19, 4  ;;  %v1685_v36 = vadd.f32 %v354_v35, %v353_v61  ;;  %v361_v26 = vrot.slane %v360_v44, 2  ;;  %v371_v38 = vsel %vm369_vm15, %v368_v43, %v366_v51 }
 0x11b   : > { %v811_v37 = vsel %vm263_vm0, %v802_v16, 0.0  ;;  %v583_v41 = vsel %vm263_vm0, %v579_v11, 0.0  ;;  %v374_v49 = vcombine.low %v371_v38, %v370_v24  ;;  %v955_v46 = vsel %vm921_vm14, %v953_v31, %v788_v15 }
 0x11c   : > { %v806_v42 = vadd.f32 %v805_v28, %v804_v19  ;;  %v812_v45 = vrot.slane %v811_v37, 4  ;;  %vm924_vm2 = vcmask 1042432   ;;  %v888_v48 = vadd.f32 %v887_v17, %v886_v39 }
 0x11d   : > { %v895_v33 = vadd.f32 %v894_v18, %v893_v4  ;;  %vm929_vm3 = vcmask 1044480   ;;  %v898_v47 = vcombine.low %v370_v24, %v371_v38  ;;  %v590_v50 = vsel %vm263_vm0, %v581_v27, 0.0  ;;  %v1718_v38 = vpop.permute.xlu1 %425 }
 0x11e   : > { %vm932_vm4 = vcmask 1045504   ;;  %v807_v52 = vrot.slane %v806_v42, 2  ;;  %v813_v53 = vadd.f32 %v812_v45, %v811_v37  ;;  %v376_v54 = vmul.f32 %v374_v49, %v1510_v2 }
 0x11f   : > { %v356_v55 = vrot.slane %v1685_v36, 1  ;;  %v1695_v57 = vadd.f32 %v361_v26, %v360_v44  ;;  %v584_v58 = vrot.slane %v583_v41, 4  ;;  %vm935_vm5 = vcmask 1046528  }
 0x120   : > { %v900_v40 = vmul.f32 %v898_v47, %v1510_v2  ;;  %v808_v61 = vadd.f32 %v807_v52, %v806_v42  ;;  %v814_v62 = vrot.slane %v813_v53, 2  ;;  %v399_v60 = vsel %vm398_vm1, %v395_v34, %v397_v29 }
 0x121   : > { %v400_v63 = vsel %vm398_vm1, %v397_v29, %v395_v34  ;;  %v889_v39 = vrot.slane %v888_v48, 1  ;;  %v896_v43 = vrot.slane %v895_v33, 1  ;;  %v591_v51 = vrot.slane %v590_v50, 4 }
 0x122   : > { %v902_v31 = vcombine.high %v900_v40, %v900_v40  ;;  %v809_v4 = vrot.slane %v808_v61, 1  ;;  %v815_v5 = vadd.f32 %v814_v62, %v813_v53  ;;  %v380_v9 = vsel %vm263_vm0, %v376_v54, 0.0 }
 0x123   : > { %v904_v10 = vsel %vm263_vm0, %v900_v40, 0.0  ;;  %v363_v11 = vrot.slane %v1695_v57, 1  ;;  %v585_v35 = vadd.f32 %v584_v58, %v583_v41  ;;  %v378_v44 = vcombine.high %v376_v54, %v376_v54  ;;  %v424_v41 = vpop.permute.xlu0 %423 }
 0x124   : > { %v403_v32 = vcombine.low %v400_v63, %v399_v60  ;;  %vm619_vm6 = vcmp.lt.s32.totalorder %v1513_v6, 126  ;;  %v810_v15 = vadd.f32 %v809_v4, %v808_v61  ;;  %v816_v17 = vrot.slane %v815_v5, 1  ;;  %v647_v4 = vpop.permute.xlu1 %646 }
 0x125   : > { %v905_v18 = vrot.slane %v904_v10, 4  ;;  %v911_v16 = vsel %vm263_vm0, %v902_v31, 0.0  ;;  %v890_v19 = vadd.f32 %v889_v39, %v888_v48  ;;  %v592_v24 = vadd.f32 %v591_v51, %v590_v50 }
 0x126   : > { %v381_v27 = vrot.slane %v380_v9, 4  ;;  %v912_v28 = vrot.slane %v911_v16, 4  ;;  %v897_v29 = vadd.f32 %v896_v43, %v895_v33  ;;  %v817_v34 = vadd.f32 %v816_v17, %v815_v5  ;;  %v970_v33 = vld [vmem:[#allocation6 + $0x20] sm:$0xff] }
 0x127   : > { %v956_v26 = vsel %vm924_vm2, %v954_v25, %v810_v15  ;;  %v906_v37 = vadd.f32 %v905_v18, %v904_v10  ;;  %vm427_vm7 = vcmp.lt.s32.totalorder %v1513_v6, 34  ;;  %v586_v42 = vrot.slane %v585_v35, 2  ;;  %v645_v5 = vpop.permute.xlu0 %644  ;;  %v973_v18 = vld [vmem:[#allocation6 + $0x38] sm:$0x1] }
 0x128   : > { %v958_v45 = vsel %vm263_vm0, %v956_v26, %v1625_v22  ;;  %v387_v49 = vsel %vm263_vm0, %v378_v44, 0.0  ;;  %v913_v48 = vadd.f32 %v912_v28, %v911_v16  ;;  %vm648_vm8 = vcmp.lt.s32.totalorder %v1513_v6, 124 }
 0x129   : > { %v957_v47 = vsel %vm924_vm2, %v955_v46, %v817_v34  ;;  %v960_v25 = vsel %vm929_vm3, %v958_v45, %v1600_v59  ;;  %v907_v50 = vrot.slane %v906_v37, 2  ;;  %v405_v52 = vmul.f32 %v403_v32, %v1510_v2  ;;  %v971_v46 = vld [vmem:[#allocation6 + $0x28] sm:$0xff]  ;;  %v455_v45 = vpop.permute.xlu1 %454 }
 0x12a   : > { %v593_v53 = vrot.slane %v592_v24, 2  ;;  %v959_v54 = vsel %vm263_vm0, %v957_v47, %v1627_v23  ;;  %v962_v22 = vsel %vm932_vm4, %v960_v25, %v1665_v8  ;;  %v382_v58 = vadd.f32 %v381_v27, %v380_v9 }
 0x12b   : > { %v961_v59 = vsel %vm929_vm3, %v959_v54, %v1607_v1  ;;  %v964_v40 = vsel %vm935_vm5, %v962_v22, %v890_v19  ;;  %v908_v61 = vadd.f32 %v907_v50, %v906_v37  ;;  %v914_v62 = vrot.slane %v913_v48, 2 }
 0x12c   : > { %v587_v60 = vadd.f32 %v586_v42, %v585_v35  ;;  %v963_v23 = vsel %vm932_vm4, %v961_v59, %v1673_v21  ;;  %v978_v8 = vmul.f32 %v970_v33, %v964_v40  ;;  %v388_v63 = vrot.slane %v387_v49, 4  ;;  %v972_v35 = vld [vmem:[#allocation6 + $0x30] sm:$0x1] }
 0x12d   : > { %v965_v39 = vsel %vm935_vm5, %v963_v23, %v897_v29  ;;  %v909_v43 = vrot.slane %v908_v61, 1  ;;  %v915_v51 = vadd.f32 %v914_v62, %v913_v48  ;;  %v407_v31 = vcombine.high %v405_v52, %v405_v52 }
 0x12e   : > { %v357_v1 = vadd.f32 %v356_v55, %v1685_v36  ;;  %v594_v9 = vadd.f32 %v593_v53, %v592_v24  ;;  %v979_v10 = vmul.f32 %v971_v46, %v965_v39  ;;  %986 = vst [vmem:[%s1737_s19 + $0x20] sm:$0xff] %v978_v8  ;;  %v383_v44 = vrot.slane %v382_v58, 2 }
 0x12f   : > { %v910_v21 = vadd.f32 %v909_v43, %v908_v61  ;;  %v916_v32 = vrot.slane %v915_v51, 1  ;;  %v409_v15 = vsel %vm263_vm0, %v405_v52, 0.0  ;;  %v620_v17 = vsel %vm619_vm6, %v1705_v14, %v1703_v0 }
 0x130   : > { %vm456_vm9 = vcmp.lt.s32.totalorder %v1513_v6, 32  ;;  %v364_v36 = vadd.f32 %v363_v11, %v1695_v57  ;;  %v588_v55 = vrot.slane %v587_v60, 1  ;;  %987 = vst [vmem:[%s1737_s19 + $0x28] sm:$0xff] %v979_v10  ;;  %v389_v16 = vadd.f32 %v388_v63, %v387_v49  ;;  %v453_v49 = vpop.permute.xlu0 %452 }
 0x131   : > { %v621_v19 = vsel %vm619_vm6, %v1703_v0, %v1705_v14  ;;  %v917_v24 = vadd.f32 %v916_v32, %v915_v51  ;;  %v980_v27 = vmul.f32 %v972_v35, %v910_v21  ;;  %v416_v28 = vsel %vm263_vm0, %v407_v31, 0.0 }
 0x132   : > { %v624_v29 = vcombine.low %v620_v17, %v621_v19  ;;  %vm677_vm10 = vcmp.lt.s32.totalorder %v1513_v6, 100  ;;  %v595_v34 = vrot.slane %v594_v9, 1  ;;  %v384_v57 = vadd.f32 %v383_v44, %v382_v58 }
 0x133   : > { %v410_v11 = vrot.slane %v409_v15, 4  ;;  %v428_v26 = vsel %vm427_vm7, %v424_v41, %v1718_v38  ;;  %v981_v37 = vmul.f32 %v973_v18, %v917_v24  ;;  %988 = vst [vmem:[%s1737_s19 + $0x30] sm:$0x1] %v980_v27  ;;  %v429_v0 = vsel %vm427_vm7, %v1718_v38, %v424_v41 }
 0x134   : > { %v626_v42 = vmul.f32 %v624_v29, %v1510_v2  ;;  %v649_v14 = vsel %vm648_vm8, %v645_v5, %v647_v4  ;;  %v390_v48 = vrot.slane %v389_v16, 2  ;;  %v417_v33 = vrot.slane %v416_v28, 4  ;;  %v674_v43 = vpop.permute.xlu0 %673 }
 0x135   : > { %v432_v47 = vcombine.low %v429_v0, %v428_v26  ;;  %v650_v25 = vsel %vm648_vm8, %v647_v4, %v645_v5  ;;  %v941_v50 = vsel %vm921_vm14, %v1591_v56, %v1675_v13  ;;  %989 = vst [vmem:[%s1737_s19 + $0x38] sm:$0x1] %v981_v37  ;;  %v925_v41 = vsel %vm924_vm2, %v1662_v3, %v357_v1 }
 0x136   : > { %v628_v52 = vcombine.high %v626_v42, %v626_v42  ;;  %v630_v53 = vsel %vm263_vm0, %v626_v42, 0.0  ;;  %v653_v38 = vcombine.low %v649_v14, %v650_v25  ;;  %v926_v54 = vsel %vm924_vm2, %v1670_v12, %v364_v36  ;;  %v676_v12 = vpop.permute.xlu1 %675 }
 0x137   : > { %v411_v22 = vadd.f32 %v410_v11, %v409_v15  ;;  %v434_v58 = vmul.f32 %v432_v47, %v1510_v2  ;;  %v589_v46 = vadd.f32 %v588_v55, %v587_v60  ;;  %v596_v59 = vadd.f32 %v595_v34, %v594_v9 }
 0x138   : > { %v637_v40 = vsel %vm263_vm0, %v628_v52, 0.0  ;;  %v655_v56 = vmul.f32 %v653_v38, %v1510_v2  ;;  %v385_v13 = vrot.slane %v384_v57, 1  ;;  %v391_v61 = vadd.f32 %v390_v48, %v389_v16 }
 0x139   : > { %v418_v62 = vadd.f32 %v417_v33, %v416_v28  ;;  %v631_v23 = vrot.slane %v630_v53, 4  ;;  %v436_v8 = vcombine.high %v434_v58, %v434_v58  ;;  %v438_v63 = vsel %vm263_vm0, %v434_v58, 0.0 }
 0x13a   : > { %v657_v3 = vcombine.high %v655_v56, %v655_v56  ;;  %v659_v39 = vsel %vm263_vm0, %v655_v56, 0.0  ;;  %v412_v51 = vrot.slane %v411_v22, 2  ;;  %v638_v31 = vrot.slane %v637_v40, 4 }
 0x13b   : > { %v457_v60 = vsel %vm456_vm9, %v453_v49, %v455_v45  ;;  %v458_v4 = vsel %vm456_vm9, %v455_v45, %v453_v49  ;;  %v439_v5 = vrot.slane %v438_v63, 4  ;;  %v445_v1 = vsel %vm263_vm0, %v436_v8, 0.0 }
 0x13c   : > { %v660_v9 = vrot.slane %v659_v39, 4  ;;  %v666_v10 = vsel %vm263_vm0, %v657_v3, 0.0  ;;  %v392_v35 = vrot.slane %v391_v61, 1  ;;  %v419_v44 = vrot.slane %v418_v62, 2 }
 0x13d   : > { %v446_v21 = vrot.slane %v445_v1, 4  ;;  %v678_v32 = vsel %vm677_vm10, %v674_v43, %v676_v12  ;;  %v632_v15 = vadd.f32 %v631_v23, %v630_v53  ;;  %v440_v17 = vadd.f32 %v439_v5, %v438_v63 }
 0x13e   : > { %v667_v36 = vrot.slane %v666_v10, 4  ;;  %v461_v55 = vcombine.low %v458_v4, %v457_v60  ;;  %v386_v18 = vadd.f32 %v385_v13, %v384_v57  ;;  %v413_v16 = vadd.f32 %v412_v51, %v411_v22  ;;  %v1187_v22 = vld [vmem:[%s195_s8] sm:$0xff] }
 0x13f   : > { %v447_v19 = vadd.f32 %v446_v21, %v445_v1  ;;  %v679_v24 = vsel %vm677_vm10, %v676_v12, %v674_v43  ;;  %v639_v27 = vadd.f32 %v638_v31, %v637_v40  ;;  %v441_v28 = vrot.slane %v440_v17, 2 }
 0x140   : > { %v661_v29 = vadd.f32 %v660_v9, %v659_v39  ;;  %v463_v34 = vmul.f32 %v461_v55, %v1510_v2  ;;  %v1804_v11 = vsel %vm924_vm2, %v1682_v7, %v589_v46  ;;  %v393_v26 = vadd.f32 %v392_v35, %v391_v61 }
 0x141   : > { %v668_v37 = vadd.f32 %v667_v36, %v666_v10  ;;  %v682_v42 = vcombine.low %v678_v32, %v679_v24  ;;  %v420_v0 = vadd.f32 %v419_v44, %v418_v62  ;;  %v633_v57 = vrot.slane %v632_v15, 2 }
 0x142   : > { %v448_v14 = vrot.slane %v447_v19, 2  ;;  %v465_v45 = vcombine.high %v463_v34, %v463_v34  ;;  %v1807_v6 = vsel %vm924_vm2, %v941_v50, %v596_v59  ;;  %v927_v49 = vsel %vm263_vm0, %v925_v41, %v386_v18 }
 0x143   : > { %v442_v48 = vadd.f32 %v441_v28, %v440_v17  ;;  %v467_v2 = vsel %vm263_vm0, %v463_v34, 0.0  ;;  %v414_v33 = vrot.slane %v413_v16, 1  ;;  %v640_v47 = vrot.slane %v639_v27, 2 }
 0x144   : > { %v662_v7 = vrot.slane %v661_v29, 2  ;;  %v468_v25 = vrot.slane %v467_v2, 4  ;;  %v928_v52 = vsel %vm263_vm0, %v926_v54, %v393_v26  ;;  %v669_v53 = vrot.slane %v668_v37, 2 }
 0x145   : > { %v474_v38 = vsel %vm263_vm0, %v465_v45, 0.0  ;;  %v684_v58 = vmul.f32 %v1187_v22, %v682_v42  ;;  %v421_v46 = vrot.slane %v420_v0, 1  ;;  %v634_v50 = vadd.f32 %v633_v57, %v632_v15 }
 0x146   : > { %v449_v59 = vadd.f32 %v448_v14, %v447_v19  ;;  %v469_v40 = vadd.f32 %v468_v25, %v467_v2  ;;  %v443_v41 = vrot.slane %v442_v48, 1  ;;  %v475_v56 = vrot.slane %v474_v38, 4  ;;  %v967_v14 = vld [vmem:[#allocation6 + $0x8] sm:$0xff] }
 0x147   : > { %v686_v13 = vcombine.high %v684_v58, %v684_v58  ;;  %v688_v61 = vsel %vm263_vm0, %v684_v58, 0.0  ;;  %v415_v62 = vadd.f32 %v414_v33, %v413_v16  ;;  %v641_v23 = vadd.f32 %v640_v47, %v639_v27  ;;  %v966_v16 = vld [vmem:[#allocation6] sm:$0xff]  ;;  %v969_v58 = vld [vmem:[#allocation6 + $0x18] sm:$0xff] }
 0x148   : > { %v663_v8 = vadd.f32 %v662_v7, %v661_v29  ;;  %v470_v63 = vrot.slane %v469_v40, 2  ;;  %v670_v54 = vadd.f32 %v669_v53, %v668_v37  ;;  %v476_v3 = vadd.f32 %v475_v56, %v474_v38  ;;  %v968_v53 = vld [vmem:[#allocation6 + $0x10] sm:$0xff] }
 0x149   : > { %v689_v39 = vrot.slane %v688_v61, 4  ;;  %v695_v12 = vsel %vm263_vm0, %v686_v13, 0.0  ;;  %v422_v43 = vadd.f32 %v421_v46, %v420_v0  ;;  %v450_v51 = vrot.slane %v449_v59, 1 }
 0x14a   : > { %v471_v31 = vadd.f32 %v470_v63, %v469_v40  ;;  %v696_v60 = vrot.slane %v695_v12, 4  ;;  %v635_v4 = vrot.slane %v634_v50, 1  ;;  %v444_v5 = vadd.f32 %v443_v41, %v442_v48 }
 0x14b   : > { %v477_v1 = vrot.slane %v476_v3, 2  ;;  %v690_v9 = vadd.f32 %v689_v39, %v688_v61  ;;  %v642_v10 = vrot.slane %v641_v23, 1  ;;  %v664_v35 = vrot.slane %v663_v8, 1 }
 0x14c   : > { %v472_v44 = vrot.slane %v471_v31, 1  ;;  %v697_v21 = vadd.f32 %v696_v60, %v695_v12  ;;  %v930_v32 = vsel %vm929_vm3, %v927_v49, %v415_v62  ;;  %v671_v15 = vrot.slane %v670_v54, 1 }
 0x14d   : > { %v478_v17 = vadd.f32 %v477_v1, %v476_v3  ;;  %v691_v36 = vrot.slane %v690_v9, 2  ;;  %v931_v55 = vsel %vm929_vm3, %v928_v52, %v422_v43  ;;  %v451_v18 = vadd.f32 %v450_v51, %v449_v59 }
 0x14e   : > { %v473_v19 = vadd.f32 %v472_v44, %v471_v31  ;;  %v698_v24 = vrot.slane %v697_v21, 2  ;;  %v636_v27 = vadd.f32 %v635_v4, %v634_v50  ;;  %v933_v28 = vsel %vm932_vm4, %v930_v32, %v444_v5 }
 0x14f   : > { %v479_v29 = vrot.slane %v478_v17, 1  ;;  %v692_v34 = vadd.f32 %v691_v36, %v690_v9  ;;  %v643_v26 = vadd.f32 %v642_v10, %v641_v23  ;;  %v665_v37 = vadd.f32 %v664_v35, %v663_v8 }
 0x150   : > { %v936_v42 = vsel %vm935_vm5, %v933_v28, %v473_v19  ;;  %v699_v0 = vadd.f32 %v698_v24, %v697_v21  ;;  %v672_v57 = vadd.f32 %v671_v15, %v670_v54  ;;  %v944_v2 = vsel %vm263_vm0, %v1804_v11, %v1542_v20 }
 0x151   : > { %v480_v45 = vadd.f32 %v479_v29, %v478_v17  ;;  %v974_v49 = vmul.f32 %v966_v16, %v936_v42  ;;  %v693_v48 = vrot.slane %v692_v34, 1  ;;  %v934_v33 = vsel %vm932_vm4, %v931_v55, %v451_v18 }
 0x152   : > { %v700_v47 = vrot.slane %v699_v0, 1  ;;  %v945_v7 = vsel %vm263_vm0, %v1807_v6, %v1551_v30  ;;  %v946_v25 = vsel %vm929_vm3, %v944_v2, %v636_v27 }
 0x153   : > { %v937_v52 = vsel %vm935_vm5, %v934_v33, %v480_v45  ;;  %982 = vst [vmem:[%s1737_s19] sm:$0xff] %v974_v49  ;;  %v694_v38 = vadd.f32 %v693_v48, %v692_v34  ;;  %v947_v22 = vsel %vm929_vm3, %v945_v7, %v643_v26  ;;  %v948_v20 = vsel %vm932_vm4, %v946_v25, %v665_v37 }
 0x154   : > { %v975_v11 = vmul.f32 %v967_v14, %v937_v52  ;;  %v701_v46 = vadd.f32 %v700_v47, %v699_v0  ;;  %v949_v50 = vsel %vm932_vm4, %v947_v22, %v672_v57 }
 0x155   : > { %v950_v30 = vsel %vm935_vm5, %v948_v20, %v694_v38 }
 0x156   : > { %983 = vst [vmem:[%s1737_s19 + $0x8] sm:$0xff] %v975_v11  ;;  %v951_v6 = vsel %vm935_vm5, %v949_v50, %v701_v46  ;;  %v976_v59 = vmul.f32 %v968_v53, %v950_v30 }
 0x157   : > { %v977_v40 = vmul.f32 %v969_v58, %v951_v6 }
 0x158   : > { %984 = vst [vmem:[%s1737_s19 + $0x10] sm:$0xff] %v976_v59 }
 0x159   : > { %985 = vst [vmem:[%s1737_s19 + $0x18] sm:$0xff] %v977_v40 }
 0x15a PF: > { %p16_p6 = scmp.ge.s32.totalorder %s1402_s22, 4   ;;  %s1867_s12 = smov %s1304_s13 }
 0x15b   : > { %s1868_s13 = smov %s1308_s14  ;;  %s1869_s14 = smov %s1419_s30 }
 0x15c   : > { %s1870_s15 = smov %s1402_s22  ;;  %18 = sbr.rel (!%p16_p6) target bundleno = 5 (0x5), region = 89 }
 0x161   :  { %1011 = vsyncpa [#allocation3], 1 }
 0x162   :  { %1013 = vsyncpa [#allocation3 + $0x1], 1 }
 0x163   :  { %1014 = vsyncpa [#allocation5], 1 }
 0x164   :  { %1016 = vsyncpa [#allocation5 + $0x1], 1 }

</bundles_post_ra>
